<compile_context>
chip_gen: v7x
topology: tpu7x:2x2x1
jax: 0.10.0
libtpu: 0.0.40
codegen_flags: <defaults>
</compile_context>

<pallas_src>
import functools

import jax
import jax.numpy as jnp
from jax.experimental import pallas as pl
from jax.experimental.pallas import tpu as pltpu


def _round_up(x, m):
    return (x + m - 1) // m * m


def _attention_kernel(h_ref, p_ref, feats_ref, wh_ref, bh_ref, wa_ref,
                      *rest, use_mask):
    if use_mask:
        mask_ref, o_ref = rest
    else:
        (o_ref,) = rest

    # h2att linear: (TB, R) @ (R, H) -> (TB, H) on the MXU, f32 accumulate.
    h = h_ref[...].astype(jnp.float32)
    att_h = jnp.dot(h, wh_ref[...],
                    preferred_element_type=jnp.float32) + bh_ref[...]

    # dot = tanh(p_att_feats + att_h)  -> (TB, L, H)   (VPU add + EUP tanh, f32)
    p = p_ref[...].astype(jnp.float32)
    dot = jnp.tanh(p + att_h[:, None, :])

    # alpha_net as VPU multiply + lane reduce (avoids an N=1 MXU matmul).
    # w_alpha is passed as a (1, H) row; b_alpha is a uniform shift of the
    # logits and cancels exactly under softmax, so it is dropped.
    logits = jnp.sum(dot * wa_ref[...], axis=-1)            # (TB, L)

    # softmax over att_size (lane reduce + EUP exp).
    m = jnp.max(logits, axis=-1, keepdims=True)
    e = jnp.exp(logits - m)
    w = e / jnp.sum(e, axis=-1, keepdims=True)              # (TB, L)

    if use_mask:
        mask = mask_ref[...].astype(jnp.float32)            # (TB, L) -- no transpose
        w = w * mask
        w = w / (jnp.sum(w, axis=-1, keepdims=True) + 1e-10)

    # Weighted feature reduction: VPU mul + sublane reduce over L -> (TB, F).
    feats = feats_ref[...].astype(jnp.float32)
    o_ref[...] = jnp.sum(feats * w[:, :, None], axis=1).astype(o_ref.dtype)


def attention_pallas(h, att_feats, p_att_feats,
                     w_h2att, b_h2att, w_alpha, b_alpha,
                     att_masks=None, tb=None):
    B, L, F = att_feats.shape
    H = p_att_feats.shape[-1]
    R = h.shape[-1]
    use_mask = att_masks is not None
    out_dtype = att_feats.dtype
    del b_alpha  # uniform logit shift; cancels under softmax.

    # --- pick a batch tile TB (rows per grid step) ------------------------
    if tb is None:
        bytes_per_row = 2 * (                       # x2: double-buffered pipeline
            L * F * att_feats.dtype.itemsize
            + L * H * p_att_feats.dtype.itemsize
            + R * h.dtype.itemsize
            + L * 4                                  # mask (f32)
            + F * jnp.dtype(out_dtype).itemsize)     # output tile
        budget = 24 * 1024 * 1024   # fits scoped VMEM on v5e/v6e/v7x with headroom
        tb = max(8, min(budget // max(bytes_per_row, 1), 256))
    tb = min(int(tb), _round_up(B, 8))
    tb = max(8, (tb // 8) * 8)

    # --- pad the batch to a multiple of TB --------------------------------
    B_pad = _round_up(B, tb)
    pad = B_pad - B
    if use_mask:
        att_masks = att_masks.reshape(B, L)
    if pad:
        h = jnp.pad(h, ((0, pad), (0, 0)))
        att_feats = jnp.pad(att_feats, ((0, pad), (0, 0), (0, 0)))
        p_att_feats = jnp.pad(p_att_feats, ((0, pad), (0, 0), (0, 0)))
        if use_mask:
            att_masks = jnp.pad(att_masks, ((0, pad), (0, 0)))

    # Large tensors keep their native dtype (bf16 halves HBM bytes); tiny
    # weight tiles go in as f32.
    inputs = [
        h,
        p_att_feats,
        att_feats,
        w_h2att.astype(jnp.float32),
        b_h2att.reshape(1, H).astype(jnp.float32),
        w_alpha.reshape(1, H).astype(jnp.float32),
    ]
    in_specs = [
        pl.BlockSpec((tb, R), lambda b: (b, 0)),
        pl.BlockSpec((tb, L, H), lambda b: (b, 0, 0)),
        pl.BlockSpec((tb, L, F), lambda b: (b, 0, 0)),
        pl.BlockSpec((R, H), lambda b: (0, 0)),
        pl.BlockSpec((1, H), lambda b: (0, 0)),
        pl.BlockSpec((1, H), lambda b: (0, 0)),
    ]
    if use_mask:
        inputs.append(att_masks)
        in_specs.append(pl.BlockSpec((tb, L), lambda b: (b, 0)))

    kernel = functools.partial(_attention_kernel, use_mask=use_mask)
    out = pl.pallas_call(
        kernel,
        out_shape=jax.ShapeDtypeStruct((B_pad, F), out_dtype),
        grid=(B_pad // tb,),
        in_specs=in_specs,
        out_specs=pl.BlockSpec((tb, F), lambda b: (b, 0)),
        compiler_params=pltpu.CompilerParams(
            dimension_semantics=("parallel",),
            vmem_limit_bytes=32 * 1024 * 1024),
    )(*inputs)
    # TODO(synk): when feat_dim < 128 in production, a lane-dense (TB*F)-wide
    # output presentation would avoid masked partial stores.
    return out[:B] if pad else out


def attention_ref(h, att_feats, p_att_feats,
                  w_h2att, b_h2att, w_alpha, b_alpha, att_masks=None):
    """Plain-JAX reference mirroring the PyTorch forward exactly."""
    att_h = h @ w_h2att + b_h2att                          # (B, H)
    dot = jnp.tanh(p_att_feats + att_h[:, None, :])        # (B, L, H)
    logits = (dot @ w_alpha)[..., 0] + b_alpha[0]          # (B, L)
    weight = jax.nn.softmax(logits, axis=1)
    if att_masks is not None:
        weight = weight * att_masks
        weight = weight / (weight.sum(1, keepdims=True) + 1e-10)
    return jnp.einsum('bl,blf->bf', weight, att_feats)


if __name__ == "__main__":
    # Small shapes consistent with the module: input_size=1,
    # rnn_size=32, att_hid_size=32, att_size=8, batch=2, feat_dim=rnn_size.
    B, R, H, L, F = 2, 32, 32, 8, 32

    key = jax.random.PRNGKey(0)
    ks = jax.random.split(key, 8)
    h = jax.random.normal(ks[0], (B, R), jnp.float32)
    att_feats = jax.random.normal(ks[1], (B, L, F), jnp.float32)
    p_att_feats = jax.random.normal(ks[2], (B, L, H), jnp.float32)

    # Deterministic parameter init (Linear weight stored as (in, out)).
    w_h2att = jax.random.normal(ks[3], (R, H), jnp.float32) * (1.0 / jnp.sqrt(R))
    b_h2att = jax.random.normal(ks[4], (H,), jnp.float32) * 0.01
    w_alpha = jax.random.normal(ks[5], (H, 1), jnp.float32) * (1.0 / jnp.sqrt(H))
    b_alpha = jax.random.normal(ks[6], (1,), jnp.float32) * 0.01
    att_masks = (jax.random.uniform(ks[7], (B, L)) > 0.25).astype(jnp.float32)

    # No-mask path (att_masks=None in the PyTorch module).
    out = attention_pallas(h, att_feats, p_att_feats,
                           w_h2att, b_h2att, w_alpha, b_alpha)
    out = jax.block_until_ready(out)
    ref = attention_ref(h, att_feats, p_att_feats,
                        w_h2att, b_h2att, w_alpha, b_alpha)
    assert jnp.allclose(out, ref, atol=1e-5, rtol=1e-5)

    # Masked path.
    out_m = attention_pallas(h, att_feats, p_att_feats,
                             w_h2att, b_h2att, w_alpha, b_alpha,
                             att_masks=att_masks)
    out_m = jax.block_until_ready(out_m)
    ref_m = attention_ref(h, att_feats, p_att_feats,
                          w_h2att, b_h2att, w_alpha, b_alpha,
                          att_masks=att_masks)
    assert jnp.allclose(out_m, ref_m, atol=1e-5, rtol=1e-5)

    # bf16 large-tensor path (memory-bound case): native-dtype pass-through,
    # f32 accumulation inside the kernel.
    out_bf = attention_pallas(h.astype(jnp.bfloat16),
                              att_feats.astype(jnp.bfloat16),
                              p_att_feats.astype(jnp.bfloat16),
                              w_h2att, b_h2att, w_alpha, b_alpha,
                              att_masks=att_masks)
    out_bf = jax.block_until_ready(out_bf)
    assert jnp.all(jnp.isfinite(out_bf.astype(jnp.float32)))
    assert jnp.allclose(out_bf.astype(jnp.float32), ref_m, atol=0.1, rtol=0.1)

    print("KERNEL_OK")
</pallas_src>

<mosaic_0001>
module attributes {stable_mosaic.version = 11 : i64} {
  func.func @_attention_kernel(%arg0: i32, %arg1: memref<8x32xf32, #tpu.memory_space<vmem>>, %arg2: memref<8x8x32xf32, #tpu.memory_space<vmem>>, %arg3: memref<8x8x32xf32, #tpu.memory_space<vmem>>, %arg4: memref<32x32xf32, #tpu.memory_space<vmem>>, %arg5: memref<1x32xf32, #tpu.memory_space<vmem>>, %arg6: memref<1x32xf32, #tpu.memory_space<vmem>>, %arg7: memref<8x32xf32, #tpu.memory_space<vmem>>) attributes {dimension_semantics = [#tpu.dimension_semantics<parallel>], iteration_bounds = array<i64: 1>, scalar_prefetch = 0 : i64, scratch_operands = 0 : i64, tpu.core_type = #tpu.core_type<tc>, window_params = [{transform_indices = @transform_0, window_bounds = array<i64: 8, 32>}, {transform_indices = @transform_1, window_bounds = array<i64: 8, 8, 32>}, {transform_indices = @transform_2, window_bounds = array<i64: 8, 8, 32>}, {pipeline_mode = #tpu.pipeline_mode<synchronous>, transform_indices = @transform_3, window_bounds = array<i64: 32, 32>}, {pipeline_mode = #tpu.pipeline_mode<synchronous>, transform_indices = @transform_4, window_bounds = array<i64: 1, 32>}, {pipeline_mode = #tpu.pipeline_mode<synchronous>, transform_indices = @transform_5, window_bounds = array<i64: 1, 32>}, {transform_indices = @transform_6, window_bounds = array<i64: 8, 32>}]} {
    %c0 = arith.constant 0 : index
    %c0_0 = arith.constant 0 : index
    %0 = vector.load %arg1[%c0, %c0_0] : memref<8x32xf32, #tpu.memory_space<vmem>>, vector<8x32xf32>
    %c0_1 = arith.constant 0 : index
    %c0_2 = arith.constant 0 : index
    %1 = vector.load %arg4[%c0_1, %c0_2] : memref<32x32xf32, #tpu.memory_space<vmem>>, vector<32x32xf32>
    %cst = arith.constant dense<0.000000e+00> : vector<8x32xf32>
    %2 = tpu.matmul %0, %1, %cst {dimension_numbers = #tpu.dot_dimension_numbers<[1], [0], [0], [1], [0, 0, 1, 1], [], []>} : vector<8x32xf32>, vector<32x32xf32>, vector<8x32xf32> -> vector<8x32xf32>
    %c0_3 = arith.constant 0 : index
    %c0_4 = arith.constant 0 : index
    %3 = vector.load %arg5[%c0_3, %c0_4] : memref<1x32xf32, #tpu.memory_space<vmem>>, vector<1x32xf32>
    %4 = vector.broadcast %3 : vector<1x32xf32> to vector<8x32xf32>
    %5 = arith.addf %2, %4 : vector<8x32xf32>
    %c0_5 = arith.constant 0 : index
    %c0_6 = arith.constant 0 : index
    %c0_7 = arith.constant 0 : index
    %6 = vector.load %arg2[%c0_5, %c0_6, %c0_7] : memref<8x8x32xf32, #tpu.memory_space<vmem>>, vector<8x8x32xf32>
    %7 = vector.shape_cast %5 : vector<8x32xf32> to vector<8x1x32xf32>
    %8 = vector.broadcast %7 : vector<8x1x32xf32> to vector<8x8x32xf32>
    %9 = arith.addf %6, %8 : vector<8x8x32xf32>
    %10 = math.tanh %9 : vector<8x8x32xf32>
    %c0_8 = arith.constant 0 : index
    %c0_9 = arith.constant 0 : index
    %11 = vector.load %arg6[%c0_8, %c0_9] : memref<1x32xf32, #tpu.memory_space<vmem>>, vector<1x32xf32>
    %12 = vector.shape_cast %11 : vector<1x32xf32> to vector<1x1x32xf32>
    %13 = vector.broadcast %12 : vector<1x1x32xf32> to vector<8x8x32xf32>
    %14 = arith.mulf %10, %13 : vector<8x8x32xf32>
    %cst_10 = arith.constant dense<0.000000e+00> : vector<8x8xf32>
    %15 = vector.multi_reduction <add>, %14, %cst_10 [2] : vector<8x8x32xf32> to vector<8x8xf32>
    %cst_11 = arith.constant dense<0xFF800000> : vector<8xf32>
    %16 = vector.multi_reduction <maximumf>, %15, %cst_11 [1] : vector<8x8xf32> to vector<8xf32>
    %17 = vector.shape_cast %16 : vector<8xf32> to vector<8x1xf32>
    %18 = vector.broadcast %17 : vector<8x1xf32> to vector<8x8xf32>
    %19 = arith.subf %15, %18 : vector<8x8xf32>
    %20 = math.exp %19 : vector<8x8xf32>
    %cst_12 = arith.constant dense<0.000000e+00> : vector<8xf32>
    %21 = vector.multi_reduction <add>, %20, %cst_12 [1] : vector<8x8xf32> to vector<8xf32>
    %22 = vector.shape_cast %21 : vector<8xf32> to vector<8x1xf32>
    %23 = vector.broadcast %22 : vector<8x1xf32> to vector<8x8xf32>
    %24 = arith.divf %20, %23 : vector<8x8xf32>
    %c0_13 = arith.constant 0 : index
    %c0_14 = arith.constant 0 : index
    %c0_15 = arith.constant 0 : index
    %25 = vector.load %arg3[%c0_13, %c0_14, %c0_15] : memref<8x8x32xf32, #tpu.memory_space<vmem>>, vector<8x8x32xf32>
    %26 = vector.shape_cast %24 : vector<8x8xf32> to vector<8x8x1xf32>
    %27 = vector.broadcast %26 : vector<8x8x1xf32> to vector<8x8x32xf32>
    %28 = arith.mulf %25, %27 : vector<8x8x32xf32>
    %cst_16 = arith.constant dense<0.000000e+00> : vector<8x32xf32>
    %29 = vector.multi_reduction <add>, %28, %cst_16 [1] : vector<8x8x32xf32> to vector<8x32xf32>
    %c0_17 = arith.constant 0 : index
    %c0_18 = arith.constant 0 : index
    %30 = vector.load %arg7[%c0_17, %c0_18] : memref<8x32xf32, #tpu.memory_space<vmem>>, vector<8x32xf32>
    tpu.vector_store %arg7[%c0_17, %c0_18], %29 {strides = array<i32>} : memref<8x32xf32, #tpu.memory_space<vmem>>, vector<8x32xf32>,
    return
  }
  func.func @transform_0(%arg0: i32) -> (i32, i32) {
    %c0_i32 = arith.constant 0 : i32
    %c0_i32_0 = arith.constant 0 : i32
    return %arg0, %c0_i32 : i32, i32
  }
  func.func @transform_1(%arg0: i32) -> (i32, i32, i32) {
    %c0_i32 = arith.constant 0 : i32
    %c0_i32_0 = arith.constant 0 : i32
    %c0_i32_1 = arith.constant 0 : i32
    return %arg0, %c0_i32, %c0_i32_0 : i32, i32, i32
  }
  func.func @transform_2(%arg0: i32) -> (i32, i32, i32) {
    %c0_i32 = arith.constant 0 : i32
    %c0_i32_0 = arith.constant 0 : i32
    %c0_i32_1 = arith.constant 0 : i32
    return %arg0, %c0_i32, %c0_i32_0 : i32, i32, i32
  }
  func.func @transform_3(%arg0: i32) -> (i32, i32) {
    %c0_i32 = arith.constant 0 : i32
    %c0_i32_0 = arith.constant 0 : i32
    %c0_i32_1 = arith.constant 0 : i32
    return %c0_i32, %c0_i32_0 : i32, i32
  }
  func.func @transform_4(%arg0: i32) -> (i32, i32) {
    %c0_i32 = arith.constant 0 : i32
    %c0_i32_0 = arith.constant 0 : i32
    %c0_i32_1 = arith.constant 0 : i32
    return %c0_i32, %c0_i32_0 : i32, i32
  }
  func.func @transform_5(%arg0: i32) -> (i32, i32) {
    %c0_i32 = arith.constant 0 : i32
    %c0_i32_0 = arith.constant 0 : i32
    %c0_i32_1 = arith.constant 0 : i32
    return %c0_i32, %c0_i32_0 : i32, i32
  }
  func.func @transform_6(%arg0: i32) -> (i32, i32) {
    %c0_i32 = arith.constant 0 : i32
    %c0_i32_0 = arith.constant 0 : i32
    return %arg0, %c0_i32 : i32, i32
  }
}

</mosaic_0001>

<bundles_post_ra>
// kernel: tpu_custom_call.1
= control target key start
LH: loop header
LB: loop body
LE: loop exit
PB: predicated region body
PF: predicated region fallthrough
CT: control target
= control target key end

     0   :  { %11 = vsyncpa [#allocation3], 0  ;;  %s1188_s0 = inlined_call_operand.hbm [shape: f32[8,32], index: 0, kind: input, shape index: {}]   ;;  %s1189_s1 = inlined_call_operand.hbm [shape: f32[8,8,32], index: 1, kind: input, shape index: {}]   ;;  %s1190_s2 = inlined_call_operand.hbm [shape: f32[8,8,32], index: 2, kind: input, shape index: {}]   ;;  %s1191_s3 = inlined_call_operand.hbm [shape: f32[32,32], index: 3, kind: input, shape index: {}]   ;;  %s1192_s4 = inlined_call_operand.vmem [shape: f32[1,32], index: 4, kind: input, shape index: {}]   ;;  %s1193_s5 = inlined_call_operand.vmem [shape: f32[1,32], index: 5, kind: input, shape index: {}]   ;;  %s1194_s6 = inlined_call_operand.hbm [shape: f32[8,32], index: 6, kind: output, shape index: {}]  }
   0x1   :  { %12 = vsyncpa [#allocation6], 0 }
   0x2   :  { %13 = vsyncpa [#allocation9], 0 }
   0x3   :  { %14 = vsyncpa [#allocation4], 0  ;;  %s925_s21 = smov [#allocation5]   ;;  %s807_s25 = scalar_lea.hbm %s1189_s1, 1024 }
   0x4   :  { %s30_s22 = sshll.u32 %s925_s21, 4  ;;  %p808_p0 = scmp.ne.s32.totalorder %s1189_s1, %s807_s25  ;;  %s31_s22 = int_to_ptr.vmem [resolvable:$true] %s30_s22 }
   0x5   :  { %p811_p1 = scmp.lt.u32.totalorder %s807_s25, %s1189_s1 }
   0x7   :  { %p813_p2 = pnand %p811_p1, %p808_p0 }
   0x9   :  { %816 = shalt.err (!%p813_p2)
}
   0xa   :  { %s817_s30 = scalar_lea.vmem %s31_s22, 1024  ;;  %p822_p4 = scmp.lt.s32.totalorder %s31_s22, %s31_s22 }
   0xb   :  { %p818_p3 = scmp.ne.s32.totalorder %s31_s22, %s817_s30  ;;  %p823_p5 = scmp.lt.s32.totalorder %s817_s30, %s817_s30 }
   0xd   :  { %p824_p6 = por %p823_p5, %p822_p4 }
   0xf   :  { %p825_p7 = pnand %p824_p6, %p818_p3 }
  0x11   :  { %828 = shalt.err (!%p825_p7)
}
  0x12   :  { %s926_s7 = smov 128   ;;  %s927_s8 = smov 8  }
  0x13   :  { %36 = dma.hbm_to_vmem [thread:$0]  %s1189_s1, 1024, %s31_s22, [#allocation6], %s926_s7, %s926_s7, %s927_s8  }
  0x14   :  { %s928_s11 = smov [#allocation2]   ;;  %s929_s13 = smov [#allocation7]  }
  0x15   :  { %s21_s12 = sshll.u32 %s928_s11, 4  ;;  %s42_s14 = sshll.u32 %s929_s13, 4  ;;  %s22_s12 = int_to_ptr.vmem [resolvable:$true] %s21_s12  ;;  %s43_s14 = int_to_ptr.vmem [resolvable:$true] %s42_s14 }
  0x16   :  { %s829_s17 = scalar_lea.hbm %s1188_s0, 128 }
  0x17   :  { %p830_p8 = scmp.ne.s32.totalorder %s1188_s0, %s829_s17  ;;  %p833_p9 = scmp.lt.u32.totalorder %s829_s17, %s1188_s0 }
  0x19   :  { %p835_p10 = pnand %p833_p9, %p830_p8 }
  0x1b   :  { %838 = shalt.err (!%p835_p10)
}
  0x1c   :  { %s839_s1 = scalar_lea.vmem %s22_s12, 128  ;;  %p844_p12 = scmp.lt.s32.totalorder %s22_s12, %s22_s12 }
  0x1d   :  { %p840_p11 = scmp.ne.s32.totalorder %s22_s12, %s839_s1  ;;  %p845_p13 = scmp.lt.s32.totalorder %s839_s1, %s839_s1 }
  0x1f   :  { %p846_p0 = por %p845_p13, %p844_p12 }
  0x21   :  { %p847_p1 = pnand %p846_p0, %p840_p11 }
  0x23   :  { %850 = shalt.err (!%p847_p1)
}
  0x24   :  { %24 = dma.hbm_to_vmem [thread:$0]  %s1188_s0, 128, %s22_s12, [#allocation3]  }
  0x25   :  { %s851_s26 = scalar_lea.hbm %s1190_s2, 1024 }
  0x26   :  { %p852_p2 = scmp.ne.s32.totalorder %s1190_s2, %s851_s26  ;;  %p855_p3 = scmp.lt.u32.totalorder %s851_s26, %s1190_s2 }
  0x28   :  { %p857_p4 = pnand %p855_p3, %p852_p2 }
  0x2a   :  { %860 = shalt.err (!%p857_p4)
}
  0x2b   :  { %s861_s9 = scalar_lea.vmem %s43_s14, 1024  ;;  %p866_p6 = scmp.lt.s32.totalorder %s43_s14, %s43_s14 }
  0x2c   :  { %p862_p5 = scmp.ne.s32.totalorder %s43_s14, %s861_s9  ;;  %p867_p7 = scmp.lt.s32.totalorder %s861_s9, %s861_s9 }
  0x2e   :  { %p868_p8 = por %p867_p7, %p866_p6 }
  0x30   :  { %p869_p9 = pnand %p868_p8, %p862_p5 }
  0x32   :  { %872 = shalt.err (!%p869_p9)
}
  0x33   :  { %48 = dma.hbm_to_vmem [thread:$0]  %s1190_s2, 1024, %s43_s14, [#allocation6], %s926_s7, %s926_s7, %s927_s8  }
  0x34   :  { %s930_s11 = smov [#allocation8]   ;;  %s873_s16 = scalar_lea.hbm %s1191_s3, 512 }
  0x35   :  { %s54_s12 = sshll.u32 %s930_s11, 4  ;;  %p874_p10 = scmp.ne.s32.totalorder %s1191_s3, %s873_s16  ;;  %s55_s12 = int_to_ptr.vmem [resolvable:$true] %s54_s12 }
  0x36   :  { %p877_p11 = scmp.lt.u32.totalorder %s873_s16, %s1191_s3 }
  0x38   :  { %p879_p12 = pnand %p877_p11, %p874_p10 }
  0x3a   :  { %882 = shalt.err (!%p879_p12)
}
  0x3b   :  { %s883_s21 = scalar_lea.vmem %s55_s12, 512  ;;  %p888_p0 = scmp.lt.s32.totalorder %s55_s12, %s55_s12 }
  0x3c   :  { %p884_p13 = scmp.ne.s32.totalorder %s55_s12, %s883_s21  ;;  %p889_p1 = scmp.lt.s32.totalorder %s883_s21, %s883_s21 }
  0x3e   :  { %p890_p2 = por %p889_p1, %p888_p0 }
  0x40   :  { %p891_p3 = pnand %p890_p2, %p884_p13 }
  0x42   :  { %894 = shalt.err (!%p891_p3)
}
  0x43   :  { %60 = dma.hbm_to_vmem [thread:$0]  %s1191_s3, 512, %s55_s12, [#allocation9], %s926_s7, %s926_s7, %s927_s8  }
  0x44   :  { %917 = dma.done.wait [#allocation3], 128  }
  0x45   :  { %918 = vsyncadd [#allocation3], 4294967168 }
  0x46   :  { %919 = dma.done.wait [#allocation6], 2048  }
  0x47   :  { %920 = vsyncadd [#allocation6], 4294965248 }
  0x48   :  { %921 = dma.done.wait [#allocation9], 512  }
  0x49   :  { %922 = vsyncadd [#allocation9], 4294966784  ;;  %v931_v0 = vmov 0.0|0.0   ;;  %vm932_vm0 = vmmov 0   ;;  %v933_v1 = vmov 0.0   ;;  %v78_v2 = vld [vmem:[#allocation8] sm:$0xff]  ;;  %v176_v11 = vlaneseq }
  0x4a   :  { %739 = vmatprep.subr.bf16.mxu0 %v931_v0  ;;  %736 = vmatprep.mubr.msk.f32.mxu0 %vm932_vm0, %v933_v1  ;;  %v79_v3 = vld [vmem:[#allocation8 + $0x8] sm:$0xff]  ;;  %v80_v4 = vld [vmem:[#allocation8 + $0x10] sm:$0xff]  ;;  %v81_v6 = vld [vmem:[#allocation8 + $0x18] sm:$0xff]  ;;  %vm89_vm1 = vcmask 261120   ;;  %v934_v9 = vmov 1966171168  }
  0x4b   :  { %v740_v5 = vpack.c.bf16 %v79_v3, %v78_v2  ;;  %v743_v7 = vpack.c.bf16 %v81_v6, %v80_v4  ;;  %v77_v8 = vld [vmem:[#allocation2] sm:$0xff]  ;;  %v174_v10 = vunpack.c.l.s4 %v934_v9  ;;  %v1031_v13 = vshrl.u32 %v176_v11, 7  ;;  %v163_v25 = vld [vmem:[#allocation5] sm:$0xff]  ;;  %v164_v31 = vld [vmem:[#allocation5 + $0x8] sm:$0xff] }
  0x4c   :  { %v720_v14 = vld [vmem:[%s1192_s4] ss:$0 sm:$0xff]  ;;  %v165_v32 = vld [vmem:[#allocation5 + $0x10] sm:$0xff]  ;;  %v167_v38 = vld [vmem:[#allocation5 + $0x20] sm:$0xff]  ;;  %vm358_vm2 = vcmask 1041409   ;;  %vm360_vm3 = vcmask 1042434  }
  0x4d   :  { %741 = vmatpush3.bf16.msra.mxu0 %v740_v5  ;;  %v175_v12 = vunpack.c.0.s8 %v174_v10  ;;  %v1038_v21 = vsub.s32 0, %v1031_v13  ;;  %v166_v37 = vld [vmem:[#allocation5 + $0x18] sm:$0xff]  ;;  %v168_v45 = vld [vmem:[#allocation5 + $0x28] sm:$0xff]  ;;  %v169_v49 = vld [vmem:[#allocation5 + $0x30] sm:$0xff]  ;;  %vm362_vm4 = vcmask 1043459   ;;  %vm364_vm5 = vcmask 1044484  }
  0x4e   :  { %742 = vmatprep.subr.bf16.mxu0 %v931_v0  ;;  %v170_v55 = vld [vmem:[#allocation5 + $0x38] sm:$0xff]  ;;  %vm366_vm6 = vcmask 1045509   ;;  %vm368_vm7 = vcmask 1046534   ;;  %vm370_vm8 = vcmask 1047559   ;;  %vm373_vm9 = vcmask 64512  }
  0x4f   :  { %v178_v15 = vsub.s32 %v175_v12, %v1031_v13  ;;  %v722_v57 = vld [vmem:[%s1193_s5] ss:$0 sm:$0xff]  ;;  %s936_s5 = smov [#allocation10]  }
  0x50   :  { %s709_s1 = sshll.u32 %s936_s5, 4  ;;  %s710_s1 = int_to_ptr.vmem [resolvable:$true] %s709_s1 }
  0x51   :  { %744 = vmatpush3.bf16.msra.mxu0 %v743_v7  ;;  %s895_s22 = scalar_lea.vmem %s710_s1, 128  ;;  %p900_p5 = scmp.lt.s32.totalorder %s710_s1, %s710_s1 }
  0x52   :  { %p896_p4 = scmp.ne.s32.totalorder %s710_s1, %s895_s22  ;;  %p901_p6 = scmp.lt.s32.totalorder %s895_s22, %s895_s22 }
  0x54   :  { %737 = vmatmul.mubr.msk.f32.vlgmr.msra.gmra.mrb[0].mxu0 %vm89_vm1, %v77_v8  ;;  %p902_p7 = por %p901_p6, %p900_p5 }
  0x56   :  { %p903_p8 = pnand %p902_p7, %p896_p4 }
 0x127   :  { %v159_v16 = vpop.f32.mrb[0].mxu0 }
 0x128   :  { %v160_v17 = vadd.f32 %v720_v14, %v159_v16  ;;  %v738_v18 = vpop.f32.mrb[1].mxu0 }
 0x12a   :  { %v172_v19 = vcombine.high %v160_v17, %v160_v17  ;;  %v179_v20 = vrot.slane %v160_v17, %v178_v15 }
 0x12c   :  { %v186_v22 = vrot.slane %v172_v19, %v178_v15  ;;  %v187_v23 = vcombine.high %v179_v20, %v179_v20  ;;  %v195_v24 = vrot.slane %v179_v20, %v178_v15  ;;  %v325_v20 = vand.u32 127, %v176_v11 }
 0x12e   :  { %v188_v26 = vcombine.high %v186_v22, %v186_v22  ;;  %v202_v27 = vrot.slane %v186_v22, %v178_v15  ;;  %v209_v28 = vrot.slane %v187_v23, %v178_v15  ;;  %v217_v29 = vcombine.high %v195_v24, %v195_v24 }
 0x12f   :  { %v224_v30 = vrot.slane %v195_v24, %v1038_v21  ;;  %v1061_v23 = vsub.s32 %v325_v20, %v1031_v13 }
 0x130   :  { %v216_v33 = vrot.slane %v188_v26, %v178_v15  ;;  %v218_v34 = vcombine.high %v202_v27, %v202_v27  ;;  %v219_v35 = vcombine.high %v209_v28, %v209_v28  ;;  %v228_v36 = vrot.slane %v209_v28, %v1038_v21 }
 0x131   :  { %v232_v39 = vrot.slane %v217_v29, %v1038_v21  ;;  %v240_v40 = vrot.slane %v202_v27, %v1038_v21  ;;  %v261_v41 = vadd.f32 %v224_v30, %v163_v25 }
 0x132   :  { %v220_v42 = vcombine.high %v216_v33, %v216_v33  ;;  %v236_v43 = vrot.slane %v219_v35, %v1038_v21  ;;  %v244_v44 = vrot.slane %v216_v33, %v1038_v21  ;;  %v248_v46 = vrot.slane %v218_v34, %v1038_v21 }
 0x133   :  { %v262_v47 = vadd.f32 %v228_v36, %v164_v31  ;;  %v263_v48 = vadd.f32 %v232_v39, %v165_v32  ;;  %759 = vtanh.f32 %v261_v41  ;;  %v265_v51 = vadd.f32 %v240_v40, %v167_v38 }
 0x134   :  { %v264_v50 = vadd.f32 %v236_v43, %v166_v37  ;;  %v252_v52 = vrot.slane %v220_v42, %v1038_v21  ;;  %v266_v53 = vadd.f32 %v244_v44, %v168_v45  ;;  %v267_v54 = vadd.f32 %v248_v46, %v169_v49 }
 0x135   :  { %761 = vtanh.f32 %v262_v47  ;;  %v935_v46 = vmov 0   ;;  %v384_v47 = vsub.s32 1, %v1031_v13  ;;  %v392_v49 = vsub.s32 3, %v1031_v13 }
 0x136   :  { %763 = vtanh.f32 %v263_v48  ;;  %v268_v56 = vadd.f32 %v252_v52, %v170_v55  ;;  %758 = vset.pattern.permute.xlu0 %v935_v46  ;;  %757 = vset.pattern.permute.xlu1 %v935_v46  ;;  %v388_v48 = vsub.s32 2, %v1031_v13 }
 0x137   :  { %765 = vtanh.f32 %v264_v50 }
 0x138   :  { %767 = vtanh.f32 %v265_v51 }
 0x139   :  { %769 = vtanh.f32 %v266_v53 }
 0x13a   :  { %771 = vtanh.f32 %v267_v54  ;;  %v396_v54 = vsub.s32 4, %v1031_v13 }
 0x13b   :  { %773 = vtanh.f32 %v268_v56 }
 0x13d   :  { %v760_v58 = vpop.eup %759 }
 0x13e   :  { %v284_v59 = vmul.f32 %v760_v58, %v722_v57 }
 0x13f   :  { %v762_v60 = vpop.eup %761 }
 0x140   :  { %v764_v61 = vpop.eup %763  ;;  %v292_v62 = vsel %vm89_vm1, %v284_v59, 0.0  ;;  %v285_v63 = vmul.f32 %v762_v60, %v722_v57 }
 0x141   :  { %v766_v0 = vpop.eup %765  ;;  %293 = vadd.xlane.f32.xlu0 %v292_v62  ;;  %v286_v1 = vmul.f32 %v764_v61, %v722_v57  ;;  %v400_v61 = vsub.s32 5, %v1031_v13 }
 0x142   :  { %v768_v2 = vpop.eup %767  ;;  %v287_v4 = vmul.f32 %v766_v0, %v722_v57  ;;  %v295_v6 = vsel %vm89_vm1, %v285_v63, 0.0 }
 0x143   :  { %v298_v3 = vsel %vm89_vm1, %v286_v1, 0.0  ;;  %v770_v5 = vpop.eup %769  ;;  %v288_v7 = vmul.f32 %v768_v2, %v722_v57  ;;  %v404_v1 = vsub.s32 6, %v1031_v13 }
 0x144   :  { %299 = vadd.xlane.f32.xlu1 %v298_v3  ;;  %v772_v8 = vpop.eup %771  ;;  %v301_v9 = vsel %vm89_vm1, %v287_v4, 0.0  ;;  %v289_v10 = vmul.f32 %v770_v5, %v722_v57  ;;  %v408_v5 = vsub.s32 7, %v1031_v13 }
 0x145   :  { %296 = vadd.xlane.f32.xlu0 %v295_v6  ;;  %v774_v12 = vpop.eup %773  ;;  %v304_v14 = vsel %vm89_vm1, %v288_v7, 0.0  ;;  %v290_v15 = vmul.f32 %v772_v8, %v722_v57 }
 0x146   :  { %v307_v16 = vsel %vm89_vm1, %v289_v10, 0.0  ;;  %v291_v17 = vmul.f32 %v774_v12, %v722_v57 }
 0x147   :  { %v310_v18 = vsel %vm89_vm1, %v290_v15, 0.0 }
 0x148   :  { %302 = vadd.xlane.f32.xlu1 %v301_v9  ;;  %v313_v19 = vsel %vm89_vm1, %v291_v17, 0.0 }
 0x149   :  { %305 = vadd.xlane.f32.xlu0 %v304_v14 }
 0x14c   :  { %308 = vadd.xlane.f32.xlu1 %v307_v16 }
 0x14d   :  { %311 = vadd.xlane.f32.xlu0 %v310_v18 }
 0x150   :  { %314 = vadd.xlane.f32.xlu1 %v313_v19 }
 0x1ce   :  { %v294_v22 = vpop.xlane.xlu0 %293 }
 0x1cf   :  { %v329_v26 = vrot.slane %v294_v22, %v1061_v23 }
 0x1d1   :  { %v300_v24 = vpop.xlane.xlu1 %299 }
 0x1d2   :  { %v297_v25 = vpop.xlane.xlu0 %296  ;;  %v337_v28 = vrot.slane %v300_v24, %v1061_v23 }
 0x1d3   :  { %v333_v27 = vrot.slane %v297_v25, %v1061_v23 }
 0x1d5   :  { %v359_v29 = vsel %vm358_vm2, %v333_v27, %v329_v26  ;;  %v303_v30 = vpop.xlane.xlu1 %302 }
 0x1d6   :  { %v361_v11 = vsel %vm360_vm3, %v337_v28, %v359_v29  ;;  %v341_v31 = vrot.slane %v303_v30, %v1061_v23  ;;  %v306_v32 = vpop.xlane.xlu0 %305 }
 0x1d7   :  { %v345_v33 = vrot.slane %v306_v32, %v1061_v23 }
 0x1d8   :  { %v363_v34 = vsel %vm362_vm4, %v341_v31, %v361_v11 }
 0x1d9   :  { %v365_v35 = vsel %vm364_vm5, %v345_v33, %v363_v34  ;;  %v309_v36 = vpop.xlane.xlu1 %308 }
 0x1da   :  { %v349_v37 = vrot.slane %v309_v36, %v1061_v23  ;;  %v312_v38 = vpop.xlane.xlu0 %311 }
 0x1db   :  { %v353_v39 = vrot.slane %v312_v38, %v1061_v23 }
 0x1dc   :  { %v367_v40 = vsel %vm366_vm6, %v349_v37, %v365_v35 }
 0x1dd   :  { %v315_v41 = vpop.xlane.xlu1 %314  ;;  %v369_v42 = vsel %vm368_vm7, %v353_v39, %v367_v40 }
 0x1de   :  { %v357_v43 = vrot.slane %v315_v41, %v1061_v23 }
 0x1e0   :  { %v371_v44 = vsel %vm370_vm8, %v357_v43, %v369_v42 }
 0x1e1   :  { %v374_v45 = vsel %vm373_vm9, %v371_v44, -inf }
 0x1e2   :  { %375 = vmax.xlane.f32.xlu0 %v374_v45 }
 0x26f   :  { %v376_v50 = vpop.xlane.xlu0 %375 }
 0x270   :  { %v381_v51 = vrot.slane %v376_v50, %v1038_v21  ;;  %v385_v52 = vrot.slane %v376_v50, %v384_v47  ;;  %v389_v53 = vrot.slane %v376_v50, %v388_v48  ;;  %v393_v55 = vrot.slane %v376_v50, %v392_v49 }
 0x271   :  { %v397_v62 = vrot.slane %v376_v50, %v396_v54  ;;  %v401_v2 = vrot.slane %v376_v50, %v400_v61  ;;  %v405_v6 = vrot.slane %v376_v50, %v404_v1  ;;  %v409_v12 = vrot.slane %v376_v50, %v408_v5 }
 0x272   :  { %v418_v56 = vsub.f32 %v294_v22, %v381_v51  ;;  %v419_v57 = vsub.f32 %v297_v25, %v385_v52  ;;  %v420_v58 = vsub.f32 %v300_v24, %v389_v53  ;;  %v421_v63 = vsub.f32 %v303_v30, %v393_v55 }
 0x273   :  { %v422_v3 = vsub.f32 %v306_v32, %v397_v62  ;;  %v423_v7 = vsub.f32 %v309_v36, %v401_v2  ;;  %v424_v14 = vsub.f32 %v312_v38, %v405_v6  ;;  %v425_v17 = vsub.f32 %v315_v41, %v409_v12  ;;  %v574_v12 = vld [vmem:[#allocation7] sm:$0xff] }
 0x274   :  { %v426_v59 = vmul.f32 1.442695, %v418_v56  ;;  %v428_v60 = vmul.f32 1.442695, %v419_v57  ;;  %v430_v0 = vmul.f32 1.442695, %v420_v58 }
 0x275   :  { %v432_v4 = vmul.f32 1.442695, %v421_v63  ;;  %v434_v8 = vmul.f32 1.442695, %v422_v3  ;;  %v436_v15 = vmul.f32 1.442695, %v423_v7 }
 0x276   :  { %775 = vpow2.f32 %v426_v59  ;;  %v438_v18 = vmul.f32 1.442695, %v424_v14  ;;  %v440_v20 = vmul.f32 1.442695, %v425_v17  ;;  %v576_v14 = vld [vmem:[#allocation7 + $0x10] sm:$0xff] }
 0x277   :  { %777 = vpow2.f32 %v428_v60 }
 0x278   :  { %779 = vpow2.f32 %v430_v0 }
 0x279   :  { %781 = vpow2.f32 %v432_v4 }
 0x27a   :  { %783 = vpow2.f32 %v434_v8 }
 0x27b   :  { %785 = vpow2.f32 %v436_v15 }
 0x27c   :  { %787 = vpow2.f32 %v438_v18 }
 0x27d   :  { %789 = vpow2.f32 %v440_v20 }
 0x280   :  { %v776_v9 = vpop.eup %775 }
 0x281   :  { %v1099_v10 = vpop.eup %777  ;;  %451 = vperm.xlu1 %757, %v776_v9  }
 0x282   :  { %454 = vperm.xlu0 %758, %v1099_v10   ;;  %v1104_v16 = vpop.eup %779 }
 0x283   :  { %v1107_v19 = vpop.eup %781 }
 0x284   :  { %v1110_v22 = vpop.eup %783 }
 0x285   :  { %457 = vperm.xlu1 %757, %v1104_v16   ;;  %v1113_v24 = vpop.eup %785 }
 0x286   :  { %v1116_v25 = vpop.eup %787 }
 0x287   :  { %v1119_v26 = vpop.eup %789 }
 0x289   :  { %460 = vperm.xlu1 %757, %v1107_v19  }
 0x28d   :  { %463 = vperm.xlu1 %757, %v1110_v22  }
 0x291   :  { %466 = vperm.xlu1 %757, %v1113_v24  }
 0x295   :  { %469 = vperm.xlu1 %757, %v1116_v25  }
 0x299   :  { %472 = vperm.xlu1 %757, %v1119_v26  }
 0x300   :  { %v452_v27 = vpop.permute.xlu1 %451 }
 0x301   :  { %v455_v11 = vpop.permute.xlu0 %454  ;;  %v477_v33 = vrot.slane %v452_v27, %v1061_v23 }
 0x302   :  { %v481_v32 = vrot.slane %v455_v11, %v1061_v23 }
 0x304   :  { %v458_v28 = vpop.permute.xlu1 %457  ;;  %v506_v38 = vsel %vm358_vm2, %v481_v32, %v477_v33 }
 0x305   :  { %v485_v34 = vrot.slane %v458_v28, %v1061_v23  ;;  %v578_v28 = vld [vmem:[#allocation7 + $0x20] sm:$0xff] }
 0x307   :  { %v507_v40 = vsel %vm360_vm3, %v485_v34, %v506_v38 }
 0x308   :  { %v461_v29 = vpop.permute.xlu1 %460 }
 0x309   :  { %v489_v35 = vrot.slane %v461_v29, %v1061_v23 }
 0x30b   :  { %v508_v42 = vsel %vm362_vm4, %v489_v35, %v507_v40  ;;  %v579_v35 = vld [vmem:[#allocation7 + $0x28] sm:$0xff] }
 0x30c   :  { %v464_v30 = vpop.permute.xlu1 %463 }
 0x30d   :  { %v493_v36 = vrot.slane %v464_v30, %v1061_v23 }
 0x30f   :  { %v509_v43 = vsel %vm364_vm5, %v493_v36, %v508_v42 }
 0x310   :  { %v467_v31 = vpop.permute.xlu1 %466 }
 0x311   :  { %v497_v39 = vrot.slane %v467_v31, %v1061_v23 }
 0x313   :  { %v510_v45 = vsel %vm366_vm6, %v497_v39, %v509_v43 }
 0x314   :  { %v470_v37 = vpop.permute.xlu1 %469 }
 0x315   :  { %v501_v41 = vrot.slane %v470_v37, %v1061_v23 }
 0x317   :  { %v511_v50 = vsel %vm368_vm7, %v501_v41, %v510_v45  ;;  %v580_v45 = vld [vmem:[#allocation7 + $0x30] sm:$0xff] }
 0x318   :  { %v473_v44 = vpop.permute.xlu1 %472 }
 0x319   :  { %v505_v46 = vrot.slane %v473_v44, %v1061_v23 }
 0x31b   :  { %v512_v51 = vsel %vm370_vm8, %v505_v46, %v511_v50 }
 0x31c   :  { %v514_v52 = vsel %vm373_vm9, %v512_v51, 0.0 }
 0x31d   :  { %515 = vadd.xlane.f32.xlu1 %v514_v52 }
 0x3aa   :  { %v516_v53 = vpop.xlane.xlu1 %515 }
 0x3ab   :  { %v521_v55 = vrot.slane %v516_v53, %v1038_v21  ;;  %v525_v56 = vrot.slane %v516_v53, %v384_v47  ;;  %v529_v57 = vrot.slane %v516_v53, %v388_v48  ;;  %v533_v23 = vrot.slane %v516_v53, %v392_v49 }
 0x3ac   :  { %v537_v59 = vrot.slane %v516_v53, %v396_v54  ;;  %v541_v21 = vrot.slane %v516_v53, %v400_v61  ;;  %v545_v48 = vrot.slane %v516_v53, %v404_v1  ;;  %v549_v54 = vrot.slane %v516_v53, %v408_v5 }
 0x3ad   :  { %791 = vrcp.f32 %v521_v55 }
 0x3ae   :  { %793 = vrcp.f32 %v525_v56 }
 0x3af   :  { %795 = vrcp.f32 %v529_v57 }
 0x3b0   :  { %797 = vrcp.f32 %v533_v23 }
 0x3b1   :  { %799 = vrcp.f32 %v537_v59  ;;  %v581_v59 = vld [vmem:[#allocation7 + $0x38] sm:$0xff] }
 0x3b2   :  { %801 = vrcp.f32 %v541_v21 }
 0x3b3   :  { %803 = vrcp.f32 %v545_v48 }
 0x3b4   :  { %805 = vrcp.f32 %v549_v54 }
 0x3b7   :  { %v792_v58 = vpop.eup %791 }
 0x3b8   :  { %v559_v60 = vmul.f32 %v792_v58, %v776_v9  ;;  %v794_v62 = vpop.eup %793  ;;  %v575_v9 = vld [vmem:[#allocation7 + $0x8] sm:$0xff] }
 0x3b9   :  { %v561_v47 = vmul.f32 %v794_v62, %v1099_v10  ;;  %v796_v63 = vpop.eup %795 }
 0x3ba   :  { %584 = vperm.xlu0 %758, %v559_v60   ;;  %v563_v49 = vmul.f32 %v796_v63, %v1104_v16  ;;  %v798_v0 = vpop.eup %797 }
 0x3bb   :  { %v565_v2 = vmul.f32 %v798_v0, %v1107_v19  ;;  %v800_v3 = vpop.eup %799  ;;  %v577_v19 = vld [vmem:[#allocation7 + $0x18] sm:$0xff] }
 0x3bc   :  { %v567_v61 = vmul.f32 %v800_v3, %v1110_v22  ;;  %v802_v4 = vpop.eup %801 }
 0x3bd   :  { %v569_v6 = vmul.f32 %v802_v4, %v1113_v24  ;;  %v804_v1 = vpop.eup %803 }
 0x3be   :  { %589 = vperm.xlu0 %758, %v561_v47   ;;  %v571_v7 = vmul.f32 %v804_v1, %v1116_v25  ;;  %v806_v8 = vpop.eup %805 }
 0x3bf   :  { %v573_v13 = vmul.f32 %v806_v8, %v1119_v26 }
 0x3c2   :  { %594 = vperm.xlu0 %758, %v563_v49  }
 0x3c6   :  { %599 = vperm.xlu0 %758, %v565_v2  }
 0x3ca   :  { %604 = vperm.xlu0 %758, %v567_v61  }
 0x3ce   :  { %609 = vperm.xlu0 %758, %v569_v6  }
 0x3d2   :  { %614 = vperm.xlu0 %758, %v571_v7  }
 0x3d6   :  { %619 = vperm.xlu0 %758, %v573_v13  }
 0x439   :  { %v585_v5 = vpop.permute.xlu0 %584 }
 0x43a   :  { %v622_v17 = vmul.f32 %v585_v5, %v574_v12 }
 0x43c   :  { %v630_v25 = vsel %vm89_vm1, %v622_v17, 0.0 }
 0x43d   :  { %v590_v10 = vpop.permute.xlu0 %589  ;;  %v631_v11 = vrot.slane %v630_v25, 4 }
 0x43e   :  { %v623_v15 = vmul.f32 %v590_v10, %v575_v9 }
 0x43f   :  { %v632_v38 = vadd.f32 %v631_v11, %v630_v25 }
 0x440   :  { %v637_v20 = vsel %vm89_vm1, %v623_v15, 0.0 }
 0x441   :  { %v595_v16 = vpop.permute.xlu0 %594  ;;  %v638_v26 = vrot.slane %v637_v20, 4  ;;  %v633_v51 = vrot.slane %v632_v38, 2 }
 0x442   :  { %v624_v18 = vmul.f32 %v595_v16, %v576_v14 }
 0x443   :  { %v639_v34 = vadd.f32 %v638_v26, %v637_v20  ;;  %v634_v21 = vadd.f32 %v633_v51, %v632_v38 }
 0x444   :  { %v644_v22 = vsel %vm89_vm1, %v624_v18, 0.0 }
 0x445   :  { %v600_v24 = vpop.permute.xlu0 %599  ;;  %v645_v29 = vrot.slane %v644_v22, 4  ;;  %v640_v43 = vrot.slane %v639_v34, 2  ;;  %v635_v1 = vrot.slane %v634_v21, 1 }
 0x446   :  { %v625_v27 = vmul.f32 %v600_v24, %v577_v19 }
 0x447   :  { %v646_v36 = vadd.f32 %v645_v29, %v644_v22  ;;  %v641_v23 = vadd.f32 %v640_v43, %v639_v34  ;;  %v636_v16 = vadd.f32 %v635_v1, %v634_v21 }
 0x448   :  { %v651_v30 = vsel %vm89_vm1, %v625_v27, 0.0 }
 0x449   :  { %v652_v31 = vrot.slane %v651_v30, 4  ;;  %v605_v32 = vpop.permute.xlu0 %604  ;;  %v647_v46 = vrot.slane %v646_v36, 2  ;;  %v642_v2 = vrot.slane %v641_v23, 1 }
 0x44a   :  { %v626_v33 = vmul.f32 %v605_v32, %v578_v28 }
 0x44b   :  { %v653_v39 = vadd.f32 %v652_v31, %v651_v30  ;;  %v648_v60 = vadd.f32 %v647_v46, %v646_v36  ;;  %v643_v9 = vadd.f32 %v642_v2, %v641_v23 }
 0x44c   :  { %v658_v37 = vsel %vm89_vm1, %v626_v33, 0.0 }
 0x44d   :  { %v659_v40 = vrot.slane %v658_v37, 4  ;;  %v610_v41 = vpop.permute.xlu0 %609  ;;  %v654_v52 = vrot.slane %v653_v39, 2  ;;  %v649_v4 = vrot.slane %v648_v60, 1  ;;  %v694_v22 = vsel %vm358_vm2, %v643_v9, %v636_v16 }
 0x44e   :  { %v627_v42 = vmul.f32 %v610_v41, %v579_v35 }
 0x44f   :  { %v660_v44 = vadd.f32 %v659_v40, %v658_v37  ;;  %v655_v47 = vadd.f32 %v654_v52, %v653_v39  ;;  %v650_v15 = vadd.f32 %v649_v4, %v648_v60 }
 0x450   :  { %v665_v50 = vsel %vm89_vm1, %v627_v42, 0.0 }
 0x451   :  { %v666_v53 = vrot.slane %v665_v50, 4  ;;  %v615_v55 = vpop.permute.xlu0 %614  ;;  %v661_v56 = vrot.slane %v660_v44, 2  ;;  %v656_v7 = vrot.slane %v655_v47, 1  ;;  %v695_v27 = vsel %vm360_vm3, %v650_v15, %v694_v22 }
 0x452   :  { %v628_v57 = vmul.f32 %v615_v55, %v580_v45 }
 0x453   :  { %v667_v58 = vadd.f32 %v666_v53, %v665_v50  ;;  %v662_v0 = vadd.f32 %v661_v56, %v660_v44  ;;  %v657_v17 = vadd.f32 %v656_v7, %v655_v47 }
 0x454   :  { %v672_v62 = vsel %vm89_vm1, %v628_v57, 0.0 }
 0x455   :  { %v668_v63 = vrot.slane %v667_v58, 2  ;;  %v673_v48 = vrot.slane %v672_v62, 4  ;;  %v620_v49 = vpop.permute.xlu0 %619  ;;  %v663_v5 = vrot.slane %v662_v0, 1  ;;  %v696_v28 = vsel %vm362_vm4, %v657_v17, %v695_v27 }
 0x456   :  { %v629_v54 = vmul.f32 %v620_v49, %v581_v59 }
 0x457   :  { %v669_v3 = vadd.f32 %v668_v63, %v667_v58  ;;  %v674_v61 = vadd.f32 %v673_v48, %v672_v62  ;;  %v664_v20 = vadd.f32 %v663_v5, %v662_v0 }
 0x458   :  { %v679_v6 = vsel %vm89_vm1, %v629_v54, 0.0 }
 0x459   :  { %v675_v8 = vrot.slane %v674_v61, 2  ;;  %v680_v13 = vrot.slane %v679_v6, 4  ;;  %v670_v10 = vrot.slane %v669_v3, 1  ;;  %v697_v30 = vsel %vm364_vm5, %v664_v20, %v696_v28 }
 0x45b   :  { %v676_v12 = vadd.f32 %v675_v8, %v674_v61  ;;  %v681_v14 = vadd.f32 %v680_v13, %v679_v6  ;;  %v671_v24 = vadd.f32 %v670_v10, %v669_v3 }
 0x45d   :  { %v677_v18 = vrot.slane %v676_v12, 1  ;;  %v682_v19 = vrot.slane %v681_v14, 2  ;;  %v698_v31 = vsel %vm366_vm6, %v671_v24, %v697_v30 }
 0x45f   :  { %v683_v25 = vadd.f32 %v682_v19, %v681_v14  ;;  %v678_v26 = vadd.f32 %v677_v18, %v676_v12 }
 0x461   :  { %v684_v29 = vrot.slane %v683_v25, 1  ;;  %v699_v32 = vsel %vm368_vm7, %v678_v26, %v698_v31 }
 0x463   :  { %v685_v11 = vadd.f32 %v684_v29, %v683_v25 }
 0x465   :  { %v700_v33 = vsel %vm370_vm8, %v685_v11, %v699_v32 }
 0x466   :  { %702 = vst.msk [vmem:[#allocation10] sm:$0xff] %vm89_vm1, %v700_v33 }
 0x467   :  { %906 = shalt.err (!%p903_p8)
}
 0x468   :  { %s907_s25 = scalar_lea.hbm %s1194_s6, 128 }
 0x469   :  { %p908_p9 = scmp.ne.s32.totalorder %s1194_s6, %s907_s25  ;;  %p911_p10 = scmp.lt.u32.totalorder %s907_s25, %s1194_s6 }
 0x46b   :  { %p913_p11 = pnand %p911_p10, %p908_p9 }
 0x46d   :  { %916 = shalt.err (!%p913_p11)
}
 0x46e   :  { %712 = dma.vmem_to_hbm [thread:$0]  %s710_s1, 128, %s1194_s6, [#allocation4]  }
 0x46f   :  { %923 = dma.done.wait [#allocation4], 128  }
 0x470   :  { %924 = vsyncadd [#allocation4], 4294967168 }
 0x471   :  { %716 = vsyncpa [#allocation3], 1 }
 0x472   :  { %717 = vsyncpa [#allocation6], 1 }
 0x473   :  { %718 = vsyncpa [#allocation9], 1 }
 0x474   :  { %719 = vsyncpa [#allocation4], 1 }

</bundles_post_ra>
